<compile_context>
chip_gen: v5e
topology: v5e:2x2
jax: 0.10.0
libtpu: 0.0.40
codegen_flags: <defaults>
</compile_context>

<pallas_src>
import jax
import jax.numpy as jnp
from jax.experimental import pallas as pl
from jax.experimental.pallas import tpu as pltpu


def _bottleneck_kernel(x_ref, code_ref,
                       wm_ref, bm_ref,
                       w1_ref, b1_ref,
                       wt_ref, bt_ref,
                       w2_ref, b2_ref,
                       o_ref):
    x = x_ref[...]                                  # [T, C_in]   bf16
    code = code_ref[...].astype(jnp.int32)          # [T, C_out]  quadrant code 0..3

    # --- main branch: 1x1 conv (BN scale folded into weight) + bias ---
    main_pre = jnp.dot(x, wm_ref[...], preferred_element_type=jnp.float32) + bm_ref[...]

    # --- ext branch: 1x1 conv + BN + ReLU ---
    ext1 = jnp.dot(x, w1_ref[...], preferred_element_type=jnp.float32) + b1_ref[...]
    ext1 = jnp.maximum(ext1, 0.0).astype(jnp.bfloat16)

    # --- transposed conv k=2 s=2: all 4 quadrants in one matmul, + BN + ReLU ---
    t_all = jnp.dot(ext1, wt_ref[...], preferred_element_type=jnp.float32) + bt_ref[...]
    t_all = jnp.maximum(t_all, 0.0).astype(jnp.bfloat16)     # [T, 4*C_int]

    # --- ext2: 1x1 conv on all quadrants via block-diagonal weight, + BN + ReLU ---
    e_all = jnp.dot(t_all, w2_ref[...], preferred_element_type=jnp.float32) + b2_ref[...]
    e_all = jnp.maximum(e_all, 0.0)                          # [T, 4*C_out]

    # --- MaxUnpool2d: main value lands only in its recorded quadrant, zeros elsewhere ---
    main_packed = jnp.concatenate(
        [jnp.where(code == q, main_pre, 0.0) for q in range(4)], axis=-1)

    # residual add + output ReLU, single lane-dense store (Dropout2d(p=0) is identity)
    o_ref[...] = jnp.maximum(main_packed + e_all, 0.0)


def upsample_bottleneck(x_nchw, idx_nchw, params, *, t_hw=512):
    N, c_in, H, W = x_nchw.shape
    c_out = params["w_main"].shape[1]
    c_int = params["w_ext1"].shape[1]
    hw = H * W

    # --- operand prep (host / XLA side) ---
    x = jnp.transpose(x_nchw, (0, 2, 3, 1)).reshape(N, hw, c_in).astype(jnp.bfloat16)

    # MaxUnpool2d flat indices -> 2-bit quadrant code (int8): q = dh*2 + dw
    idx = jnp.transpose(idx_nchw, (0, 2, 3, 1)).reshape(N, hw, c_out).astype(jnp.int32)
    pos = jnp.arange(hw, dtype=jnp.int32)[None, :, None]
    h, w = pos // W, pos % W
    dh = idx // (2 * W) - 2 * h
    dw = idx % (2 * W) - 2 * w
    code = (dh * 2 + dw).astype(jnp.int8)                     # [N, hw, c_out]

    # Fold fused-BN scales into the weights (kernel only adds biases); cast to bf16.
    wm = (params["w_main"] * params["s_main"]).astype(jnp.bfloat16)
    bm = params["b_main"].astype(jnp.float32)
    w1 = (params["w_ext1"] * params["s_ext1"]).astype(jnp.bfloat16)
    b1 = params["b_ext1"].astype(jnp.float32)
    wt = (params["w_t"] * jnp.tile(params["s_t"], (1, 4))).astype(jnp.bfloat16)
    bt = jnp.tile(params["b_t"], (1, 4)).astype(jnp.float32)
    # Block-diagonal ext2 weight: one matmul produces the full packed [T, 4*C_out] slab.
    w2q = params["w_ext2"] * params["s_ext2"]                 # [c_int, c_out]
    w2 = jnp.zeros((4 * c_int, 4 * c_out), jnp.float32)
    for q in range(4):
        w2 = w2.at[q * c_int:(q + 1) * c_int, q * c_out:(q + 1) * c_out].set(w2q)
    w2 = w2.astype(jnp.bfloat16)
    b2 = jnp.tile(params["b_ext2"], (1, 4)).astype(jnp.float32)

    flat = [wm, bm, w1, b1, wt, bt, w2, b2]

    # --- spatial tiling ---
    # t_hw is a multiple of 32 (keeps bf16/int8 sublane packing aligned); use the whole
    # image if it is smaller than one tile. Partial trailing tiles are handled by cdiv +
    # masked writeback. NOTE: channel counts that aren't multiples of 128 (e.g. this demo)
    # under-fill lanes; real ENet stages should pad C to 128 in this packed layout.
    T = hw if hw <= t_hw else t_hw
    grid = (N, pl.cdiv(hw, T))

    def const_spec(a):
        return pl.BlockSpec(a.shape, lambda n, t: (0, 0))

    out_packed = pl.pallas_call(
        _bottleneck_kernel,
        out_shape=jax.ShapeDtypeStruct((N, hw, 4 * c_out), jnp.float32),
        grid_spec=pltpu.PrefetchScalarGridSpec(
            num_scalar_prefetch=0,
            grid=grid,
            in_specs=[pl.BlockSpec((None, T, c_in), lambda n, t: (n, t, 0)),
                      pl.BlockSpec((None, T, c_out), lambda n, t: (n, t, 0))]
                     + [const_spec(a) for a in flat],
            out_specs=pl.BlockSpec((None, T, 4 * c_out), lambda n, t: (n, t, 0)),
        ),
        compiler_params=pltpu.CompilerParams(
            dimension_semantics=("parallel", "parallel"),
            vmem_limit_bytes=48 * 1024 * 1024),
    )(x, code, *flat)

    # quadrant-packed -> [N, 2H, 2W, C_out] -> NCHW
    out = out_packed.reshape(N, H, W, 2, 2, c_out)
    out = jnp.transpose(out, (0, 1, 3, 2, 4, 5)).reshape(N, 2 * H, 2 * W, c_out)
    return jnp.transpose(out, (0, 3, 1, 2))


def _reference(x_nchw, idx_nchw, p):
    """Pure-JAX f32 reference (unfused BN, per-quadrant matmuls) for validation."""
    N, c_in, H, W = x_nchw.shape
    c_out = p["w_main"].shape[1]
    c_int = p["w_ext1"].shape[1]
    hw = H * W
    x = jnp.transpose(x_nchw, (0, 2, 3, 1)).reshape(N, hw, c_in)
    idx = jnp.transpose(idx_nchw, (0, 2, 3, 1)).reshape(N, hw, c_out)

    main_pre = jnp.einsum("npc,cd->npd", x, p["w_main"]) * p["s_main"] + p["b_main"]
    ext1 = jax.nn.relu(jnp.einsum("npc,cd->npd", x, p["w_ext1"]) * p["s_ext1"] + p["b_ext1"])
    t_all = jnp.einsum("npc,cd->npd", ext1, p["w_t"])

    pos = jnp.arange(hw)[:, None]
    h, w = pos // W, pos % W
    quads = []
    for q in range(4):
        dh, dw = q // 2, q % 2
        lin = (2 * h + dh) * (2 * W) + (2 * w + dw)
        main_q = jnp.where(idx == lin[None], main_pre, 0.0)
        t_q = jax.nn.relu(t_all[:, :, q * c_int:(q + 1) * c_int] * p["s_t"] + p["b_t"])
        e_q = jax.nn.relu(jnp.einsum("npc,cd->npd", t_q, p["w_ext2"]) * p["s_ext2"] + p["b_ext2"])
        quads.append(jax.nn.relu(main_q + e_q))
    out = jnp.concatenate(quads, axis=-1).reshape(N, H, W, 2, 2, c_out)
    out = jnp.transpose(out, (0, 1, 3, 2, 4, 5)).reshape(N, 2 * H, 2 * W, c_out)
    return jnp.transpose(out, (0, 3, 1, 2))


def _fused_bn(key, c, eps=1e-5):
    k1, k2, k3, k4 = jax.random.split(key, 4)
    gamma = 1.0 + 0.1 * jax.random.normal(k1, (c,), jnp.float32)
    beta = 0.1 * jax.random.normal(k2, (c,), jnp.float32)
    mean = 0.1 * jax.random.normal(k3, (c,), jnp.float32)
    var = 1.0 + 0.1 * jnp.abs(jax.random.normal(k4, (c,), jnp.float32))
    scale = gamma / jnp.sqrt(var + eps)
    bias = beta - mean * scale
    return scale.reshape(1, c), bias.reshape(1, c)


def init_params(key, in_ch, out_ch, internal_ratio=4):
    int_ch = in_ch // internal_ratio
    ks = jax.random.split(key, 8)
    s_main, b_main = _fused_bn(ks[4], out_ch)
    s_ext1, b_ext1 = _fused_bn(ks[5], int_ch)
    s_t, b_t = _fused_bn(ks[6], int_ch)
    s_ext2, b_ext2 = _fused_bn(ks[7], out_ch)
    return {
        # 1x1 conv weights stored as [C_in, C_out]
        "w_main": 0.1 * jax.random.normal(ks[0], (in_ch, out_ch), jnp.float32),
        "s_main": s_main, "b_main": b_main,
        "w_ext1": 0.1 * jax.random.normal(ks[1], (in_ch, int_ch), jnp.float32),
        "s_ext1": s_ext1, "b_ext1": b_ext1,
        # ConvTranspose2d(k=2,s=2) weight [C_int, C_int, 2, 2] packed as [C_int, 4*C_int]
        # with quadrant q = dh*2 + dw at columns q*C_int:(q+1)*C_int.
        "w_t": 0.1 * jax.random.normal(ks[2], (int_ch, 4 * int_ch), jnp.float32),
        "s_t": s_t, "b_t": b_t,
        "w_ext2": 0.1 * jax.random.normal(ks[3], (int_ch, out_ch), jnp.float32),
        "s_ext2": s_ext2, "b_ext2": b_ext2,
    }


if __name__ == "__main__":
    N, in_ch, out_ch, ratio = 2, 8, 8, 4
    H = W = 8  # pooled resolution; output is (2H, 2W)

    key = jax.random.PRNGKey(0)
    kx, kdh, kdw, kp = jax.random.split(key, 4)

    x = jax.random.normal(kx, (N, in_ch, H, W), jnp.float32)

    # Valid MaxPool2d(k=2) indices: each pooled pixel recorded one of its 2x2 positions,
    # expressed as a flat index into the (2H, 2W) unpooled map (per channel).
    dh = jax.random.randint(kdh, (N, out_ch, H, W), 0, 2)
    dw = jax.random.randint(kdw, (N, out_ch, H, W), 0, 2)
    hh = jnp.arange(H).reshape(1, 1, H, 1)
    ww = jnp.arange(W).reshape(1, 1, 1, W)
    max_indices = ((2 * hh + dh) * (2 * W) + (2 * ww + dw)).astype(jnp.int32)

    params = init_params(kp, in_ch, out_ch, ratio)

    out = upsample_bottleneck(x, max_indices, params)
    out = jax.block_until_ready(out)

    assert out.shape == (N, out_ch, 2 * H, 2 * W), out.shape
    ref = _reference(x, max_indices, params)
    # Kernel uses bf16 MXU operands with f32 accumulation; reference is full f32.
    assert jnp.allclose(out, ref, rtol=2e-2, atol=2e-2), float(jnp.max(jnp.abs(out - ref)))

    print("KERNEL_OK")
</pallas_src>

<mosaic_0001>
module attributes {stable_mosaic.version = 11 : i64} {
  func.func @_bottleneck_kernel(%arg0: i32, %arg1: i32, %arg2: memref<1x64x8xbf16, #tpu.memory_space<vmem>>, %arg3: memref<1x64x8xi8, #tpu.memory_space<vmem>>, %arg4: memref<8x8xbf16, #tpu.memory_space<vmem>>, %arg5: memref<1x8xf32, #tpu.memory_space<vmem>>, %arg6: memref<8x2xbf16, #tpu.memory_space<vmem>>, %arg7: memref<1x2xf32, #tpu.memory_space<vmem>>, %arg8: memref<2x8xbf16, #tpu.memory_space<vmem>>, %arg9: memref<1x8xf32, #tpu.memory_space<vmem>>, %arg10: memref<8x32xbf16, #tpu.memory_space<vmem>>, %arg11: memref<1x32xf32, #tpu.memory_space<vmem>>, %arg12: memref<1x64x32xf32, #tpu.memory_space<vmem>>) attributes {dimension_semantics = [#tpu.dimension_semantics<parallel>, #tpu.dimension_semantics<parallel>], iteration_bounds = array<i64: 2, 1>, scalar_prefetch = 0 : i64, scratch_operands = 0 : i64, tpu.core_type = #tpu.core_type<tc>, window_params = [{transform_indices = @transform_0, window_bounds = array<i64: 1, 64, 8>}, {transform_indices = @transform_1, window_bounds = array<i64: 1, 64, 8>}, {pipeline_mode = #tpu.pipeline_mode<synchronous>, transform_indices = @transform_2, window_bounds = array<i64: 8, 8>}, {pipeline_mode = #tpu.pipeline_mode<synchronous>, transform_indices = @transform_3, window_bounds = array<i64: 1, 8>}, {pipeline_mode = #tpu.pipeline_mode<synchronous>, transform_indices = @transform_4, window_bounds = array<i64: 8, 2>}, {pipeline_mode = #tpu.pipeline_mode<synchronous>, transform_indices = @transform_5, window_bounds = array<i64: 1, 2>}, {pipeline_mode = #tpu.pipeline_mode<synchronous>, transform_indices = @transform_6, window_bounds = array<i64: 2, 8>}, {pipeline_mode = #tpu.pipeline_mode<synchronous>, transform_indices = @transform_7, window_bounds = array<i64: 1, 8>}, {pipeline_mode = #tpu.pipeline_mode<synchronous>, transform_indices = @transform_8, window_bounds = array<i64: 8, 32>}, {pipeline_mode = #tpu.pipeline_mode<synchronous>, transform_indices = @transform_9, window_bounds = array<i64: 1, 32>}, {transform_indices = @transform_10, window_bounds = array<i64: 1, 64, 32>}]} {
    %c0 = arith.constant 0 : index
    %c0_0 = arith.constant 0 : index
    %c0_1 = arith.constant 0 : index
    %0 = vector.load %arg2[%c0, %c0_0, %c0_1] : memref<1x64x8xbf16, #tpu.memory_space<vmem>>, vector<1x64x8xbf16>
    %1 = vector.shape_cast %0 : vector<1x64x8xbf16> to vector<64x8xbf16>
    %c0_2 = arith.constant 0 : index
    %c0_3 = arith.constant 0 : index
    %c0_4 = arith.constant 0 : index
    %2 = vector.load %arg3[%c0_2, %c0_3, %c0_4] : memref<1x64x8xi8, #tpu.memory_space<vmem>>, vector<1x64x8xi8>
    %3 = vector.shape_cast %2 : vector<1x64x8xi8> to vector<64x8xi8>
    %4 = arith.extsi %3 : vector<64x8xi8> to vector<64x8xi32>
    %c0_5 = arith.constant 0 : index
    %c0_6 = arith.constant 0 : index
    %5 = vector.load %arg4[%c0_5, %c0_6] : memref<8x8xbf16, #tpu.memory_space<vmem>>, vector<8x8xbf16>
    %cst = arith.constant dense<0.000000e+00> : vector<64x8xf32>
    %6 = tpu.matmul %1, %5, %cst {dimension_numbers = #tpu.dot_dimension_numbers<[1], [0], [0], [1], [0, 0, 1, 1], [], []>} : vector<64x8xbf16>, vector<8x8xbf16>, vector<64x8xf32> -> vector<64x8xf32>
    %c0_7 = arith.constant 0 : index
    %c0_8 = arith.constant 0 : index
    %7 = vector.load %arg5[%c0_7, %c0_8] : memref<1x8xf32, #tpu.memory_space<vmem>>, vector<1x8xf32>
    %8 = vector.broadcast %7 : vector<1x8xf32> to vector<64x8xf32>
    %9 = arith.addf %6, %8 : vector<64x8xf32>
    %c0_9 = arith.constant 0 : index
    %c0_10 = arith.constant 0 : index
    %10 = vector.load %arg6[%c0_9, %c0_10] : memref<8x2xbf16, #tpu.memory_space<vmem>>, vector<8x2xbf16>
    %cst_11 = arith.constant dense<0.000000e+00> : vector<64x2xf32>
    %11 = tpu.matmul %1, %10, %cst_11 {dimension_numbers = #tpu.dot_dimension_numbers<[1], [0], [0], [1], [0, 0, 1, 1], [], []>} : vector<64x8xbf16>, vector<8x2xbf16>, vector<64x2xf32> -> vector<64x2xf32>
    %c0_12 = arith.constant 0 : index
    %c0_13 = arith.constant 0 : index
    %12 = vector.load %arg7[%c0_12, %c0_13] : memref<1x2xf32, #tpu.memory_space<vmem>>, vector<1x2xf32>
    %13 = vector.broadcast %12 : vector<1x2xf32> to vector<64x2xf32>
    %14 = arith.addf %11, %13 : vector<64x2xf32>
    %cst_14 = arith.constant 0.000000e+00 : f32
    %15 = vector.broadcast %cst_14 : f32 to vector<64x2xf32>
    %16 = arith.maximumf %14, %15 : vector<64x2xf32>
    %17 = arith.truncf %16 : vector<64x2xf32> to vector<64x2xbf16>
    %c0_15 = arith.constant 0 : index
    %c0_16 = arith.constant 0 : index
    %18 = vector.load %arg8[%c0_15, %c0_16] : memref<2x8xbf16, #tpu.memory_space<vmem>>, vector<2x8xbf16>
    %cst_17 = arith.constant dense<0.000000e+00> : vector<64x8xf32>
    %19 = tpu.matmul %17, %18, %cst_17 {dimension_numbers = #tpu.dot_dimension_numbers<[1], [0], [0], [1], [0, 0, 1, 1], [], []>} : vector<64x2xbf16>, vector<2x8xbf16>, vector<64x8xf32> -> vector<64x8xf32>
    %c0_18 = arith.constant 0 : index
    %c0_19 = arith.constant 0 : index
    %20 = vector.load %arg9[%c0_18, %c0_19] : memref<1x8xf32, #tpu.memory_space<vmem>>, vector<1x8xf32>
    %21 = vector.broadcast %20 : vector<1x8xf32> to vector<64x8xf32>
    %22 = arith.addf %19, %21 : vector<64x8xf32>
    %cst_20 = arith.constant 0.000000e+00 : f32
    %23 = vector.broadcast %cst_20 : f32 to vector<64x8xf32>
    %24 = arith.maximumf %22, %23 : vector<64x8xf32>
    %25 = arith.truncf %24 : vector<64x8xf32> to vector<64x8xbf16>
    %c0_21 = arith.constant 0 : index
    %c0_22 = arith.constant 0 : index
    %26 = vector.load %arg10[%c0_21, %c0_22] : memref<8x32xbf16, #tpu.memory_space<vmem>>, vector<8x32xbf16>
    %cst_23 = arith.constant dense<0.000000e+00> : vector<64x32xf32>
    %27 = tpu.matmul %25, %26, %cst_23 {dimension_numbers = #tpu.dot_dimension_numbers<[1], [0], [0], [1], [0, 0, 1, 1], [], []>} : vector<64x8xbf16>, vector<8x32xbf16>, vector<64x32xf32> -> vector<64x32xf32>
    %c0_24 = arith.constant 0 : index
    %c0_25 = arith.constant 0 : index
    %28 = vector.load %arg11[%c0_24, %c0_25] : memref<1x32xf32, #tpu.memory_space<vmem>>, vector<1x32xf32>
    %29 = vector.broadcast %28 : vector<1x32xf32> to vector<64x32xf32>
    %30 = arith.addf %27, %29 : vector<64x32xf32>
    %cst_26 = arith.constant 0.000000e+00 : f32
    %31 = vector.broadcast %cst_26 : f32 to vector<64x32xf32>
    %32 = arith.maximumf %30, %31 : vector<64x32xf32>
    %c0_i32 = arith.constant 0 : i32
    %33 = vector.broadcast %c0_i32 : i32 to vector<64x8xi32>
    %34 = arith.cmpi eq, %4, %33 : vector<64x8xi32>
    %cst_27 = arith.constant 0.000000e+00 : f32
    %35 = vector.broadcast %cst_27 : f32 to vector<64x8xf32>
    %36 = arith.select %34, %9, %35 : vector<64x8xi1>, vector<64x8xf32>
    %c1_i32 = arith.constant 1 : i32
    %37 = vector.broadcast %c1_i32 : i32 to vector<64x8xi32>
    %38 = arith.cmpi eq, %4, %37 : vector<64x8xi32>
    %cst_28 = arith.constant 0.000000e+00 : f32
    %39 = vector.broadcast %cst_28 : f32 to vector<64x8xf32>
    %40 = arith.select %38, %9, %39 : vector<64x8xi1>, vector<64x8xf32>
    %c2_i32 = arith.constant 2 : i32
    %41 = vector.broadcast %c2_i32 : i32 to vector<64x8xi32>
    %42 = arith.cmpi eq, %4, %41 : vector<64x8xi32>
    %cst_29 = arith.constant 0.000000e+00 : f32
    %43 = vector.broadcast %cst_29 : f32 to vector<64x8xf32>
    %44 = arith.select %42, %9, %43 : vector<64x8xi1>, vector<64x8xf32>
    %c3_i32 = arith.constant 3 : i32
    %45 = vector.broadcast %c3_i32 : i32 to vector<64x8xi32>
    %46 = arith.cmpi eq, %4, %45 : vector<64x8xi32>
    %cst_30 = arith.constant 0.000000e+00 : f32
    %47 = vector.broadcast %cst_30 : f32 to vector<64x8xf32>
    %48 = arith.select %46, %9, %47 : vector<64x8xi1>, vector<64x8xf32>
    %49 = tpu.concatenate %36, %40, %44, %48 in 1 : vector<64x8xf32>, vector<64x8xf32>, vector<64x8xf32>, vector<64x8xf32> -> vector<64x32xf32>
    %50 = arith.addf %49, %32 : vector<64x32xf32>
    %cst_31 = arith.constant 0.000000e+00 : f32
    %51 = vector.broadcast %cst_31 : f32 to vector<64x32xf32>
    %52 = arith.maximumf %50, %51 : vector<64x32xf32>
    %c0_32 = arith.constant 0 : index
    %c0_33 = arith.constant 0 : index
    %c0_34 = arith.constant 0 : index
    %53 = vector.load %arg12[%c0_32, %c0_33, %c0_34] : memref<1x64x32xf32, #tpu.memory_space<vmem>>, vector<1x64x32xf32>
    %54 = vector.shape_cast %53 : vector<1x64x32xf32> to vector<64x32xf32>
    %55 = vector.shape_cast %52 : vector<64x32xf32> to vector<1x64x32xf32>
    tpu.vector_store %arg12[%c0_32, %c0_33, %c0_34], %55 {strides = array<i32>} : memref<1x64x32xf32, #tpu.memory_space<vmem>>, vector<1x64x32xf32>,
    return
  }
  func.func @transform_0(%arg0: i32, %arg1: i32) -> (i32, i32, i32) {
    %c0_i32 = arith.constant 0 : i32
    %c0_i32_0 = arith.constant 0 : i32
    return %arg0, %arg1, %c0_i32 : i32, i32, i32
  }
  func.func @transform_1(%arg0: i32, %arg1: i32) -> (i32, i32, i32) {
    %c0_i32 = arith.constant 0 : i32
    %c0_i32_0 = arith.constant 0 : i32
    return %arg0, %arg1, %c0_i32 : i32, i32, i32
  }
  func.func @transform_2(%arg0: i32, %arg1: i32) -> (i32, i32) {
    %c0_i32 = arith.constant 0 : i32
    %c0_i32_0 = arith.constant 0 : i32
    %c0_i32_1 = arith.constant 0 : i32
    return %c0_i32, %c0_i32_0 : i32, i32
  }
  func.func @transform_3(%arg0: i32, %arg1: i32) -> (i32, i32) {
    %c0_i32 = arith.constant 0 : i32
    %c0_i32_0 = arith.constant 0 : i32
    %c0_i32_1 = arith.constant 0 : i32
    return %c0_i32, %c0_i32_0 : i32, i32
  }
  func.func @transform_4(%arg0: i32, %arg1: i32) -> (i32, i32) {
    %c0_i32 = arith.constant 0 : i32
    %c0_i32_0 = arith.constant 0 : i32
    %c0_i32_1 = arith.constant 0 : i32
    return %c0_i32, %c0_i32_0 : i32, i32
  }
  func.func @transform_5(%arg0: i32, %arg1: i32) -> (i32, i32) {
    %c0_i32 = arith.constant 0 : i32
    %c0_i32_0 = arith.constant 0 : i32
    %c0_i32_1 = arith.constant 0 : i32
    return %c0_i32, %c0_i32_0 : i32, i32
  }
  func.func @transform_6(%arg0: i32, %arg1: i32) -> (i32, i32) {
    %c0_i32 = arith.constant 0 : i32
    %c0_i32_0 = arith.constant 0 : i32
    %c0_i32_1 = arith.constant 0 : i32
    return %c0_i32, %c0_i32_0 : i32, i32
  }
  func.func @transform_7(%arg0: i32, %arg1: i32) -> (i32, i32) {
    %c0_i32 = arith.constant 0 : i32
    %c0_i32_0 = arith.constant 0 : i32
    %c0_i32_1 = arith.constant 0 : i32
    return %c0_i32, %c0_i32_0 : i32, i32
  }
  func.func @transform_8(%arg0: i32, %arg1: i32) -> (i32, i32) {
    %c0_i32 = arith.constant 0 : i32
    %c0_i32_0 = arith.constant 0 : i32
    %c0_i32_1 = arith.constant 0 : i32
    return %c0_i32, %c0_i32_0 : i32, i32
  }
  func.func @transform_9(%arg0: i32, %arg1: i32) -> (i32, i32) {
    %c0_i32 = arith.constant 0 : i32
    %c0_i32_0 = arith.constant 0 : i32
    %c0_i32_1 = arith.constant 0 : i32
    return %c0_i32, %c0_i32_0 : i32, i32
  }
  func.func @transform_10(%arg0: i32, %arg1: i32) -> (i32, i32, i32) {
    %c0_i32 = arith.constant 0 : i32
    %c0_i32_0 = arith.constant 0 : i32
    return %arg0, %arg1, %c0_i32 : i32, i32, i32
  }
}

</mosaic_0001>

<bundles_post_ra>
// kernel: tpu_custom_call.1
= control target key start
LH: loop header
LB: loop body
LE: loop exit
PB: predicated region body
PF: predicated region fallthrough
CT: control target
= control target key end

     0   :  { %s1200_s13 = smov 0   ;;  %s1202_s14 = smov 0   ;;  %s1480_s0 = inlined_call_operand.vmem [shape: bf16[2,64,8], index: 0, kind: input, shape index: {}]   ;;  %s1481_s1 = inlined_call_operand.vmem [shape: s8[2,64,8], index: 1, kind: input, shape index: {}]   ;;  %s1482_s2 = inlined_call_operand.vmem [shape: bf16[8,8], index: 2, kind: input, shape index: {}]   ;;  %s1483_s3 = inlined_call_operand.vmem [shape: f32[1,8], index: 3, kind: input, shape index: {}]   ;;  %s1484_s4 = inlined_call_operand.vmem [shape: bf16[8,2], index: 4, kind: input, shape index: {}]   ;;  %s1485_s5 = inlined_call_operand.vmem [shape: f32[1,2], index: 5, kind: input, shape index: {}]   ;;  %s1486_s6 = inlined_call_operand.vmem [shape: bf16[2,8], index: 6, kind: input, shape index: {}]   ;;  %s1487_s7 = inlined_call_operand.vmem [shape: f32[1,8], index: 7, kind: input, shape index: {}]   ;;  %s1488_s8 = inlined_call_operand.vmem [shape: bf16[8,32], index: 8, kind: input, shape index: {}]   ;;  %s1489_s9 = inlined_call_operand.vmem [shape: f32[1,32], index: 9, kind: input, shape index: {}]   ;;  %s1490_s10 = inlined_call_operand.vmem [shape: f32[2,64,32], index: 10, kind: output, shape index: {}]  }
   0x1   :  { %s1204_s15 = smov 0  }
   0x2 LB: > { %s32_s16 = sadd.s32 1, %s1136_s14  ;;  %p1020_p0 = scmp.ge.s32.totalorder %s1140_s15, 1  ;;  %s1140_s15 = sphi %s1204_s15, %s20_s15   ;;  %s1136_s14 = sphi %s1202_s14, %s1492_s14   ;;  %s1132_s13 = sphi %s1200_s13, %s1491_s13  }
   0x3   : > { %p34_p1 = scmp.ge.s32.totalorder %s32_s16, 2  ;;  %p350_p2 = scmp.lt.s32.totalorder %s1140_s15, 3 }
   0x5   : > { %s1494_s16 = smov (%p34_p1, %s32_s16), 0  ;;  %p351_p3 = pnand %p1020_p0, %p350_p2 }
   0x6   : > { %p406_p4 = scmp.lt.s32.totalorder (!%p351_p3), %s1132_s13, 1  ;;  %s1142_s19 = smov (!%p351_p3), 8  }
   0x7   : > { %354 = sbr.rel (%p351_p3) target bundleno = 500 (0x1f4), region = 60  ;;  %s1143_s20 = smov (!%p351_p3), 24  }
   0xc   : > { %vm498_vm0 = vcmask 1043456   ;;  %v531_v0 = vld [vmem:[%s1484_s4] sm:$0xf]  ;;  %s1496_s13 = smov (!%p406_p4, %s1132_s13), 1  ;;  %vm485_vm1 = vcmask 64512   ;;  %vm598_vm2 = vcmask 1040384  }
   0xd   : > { %v537_v1 = vsel %vm498_vm0, %v531_v0, 0  ;;  %v460_v2 = vld [vmem:[%s1482_s2] sm:$0xf]  ;;  %s1061_s21 = sshll.u32 %s1496_s13, 5  ;;  %s1062_s27 = sshll.u32 %s1496_s13, 4  ;;  %vm585_vm6 = vcmask 15360  }
   0xe   : > { %546 = vmatpush.bf16.msra.mxu1 %v537_v1  ;;  %v500_v3 = vsel %vm498_vm0, %v460_v2, 0  ;;  %s413_s24 = scalar_lea.vmem %s1480_s0, %s1061_s21  ;;  %v580_v8 = vld [vmem:[%s1486_s6] sm:$0x1]  ;;  %s1247_s30 = scalar_lea.vmem %s1481_s1, %s1062_s27 }
   0xf   : > { %509 = vmatpush.bf16.msra.mxu0 %v500_v3  ;;  %v1064_v4 = vld [vmem:[%s413_s24] sm:$0xff]  ;;  %v1065_v5 = vld [vmem:[%s413_s24 + $0x8] sm:$0xff]  ;;  %v1066_v6 = vld [vmem:[%s413_s24 + $0x10] sm:$0xff]  ;;  %v600_v9 = vsel %vm598_vm2, %v580_v8, 0  ;;  %s1144_s21 = smov 16   ;;  %s1063_s28 = sshll.u32 %s1496_s13, 6 }
  0x10   : > { %v1067_v7 = vld [vmem:[%s413_s24 + $0x18] sm:$0xff]  ;;  %609 = vmatpush.bf16.msra.mxu2 %v600_v9  ;;  %v1252_v10 = vld [vmem:[%s1483_s3] ss:$0 sm:$0xff]  ;;  %v1085_v46 = vld [vmem:[%s1247_s30 + $0x8] sm:$0xff]   ;;  %s1414_s11 = scalar_lea.vmem %s1490_s10, %s1063_s28 }
  0x11   : > { %1047 = vmatmul.msk.bf16.vlgmr.msra.gmra.mxu1 %vm485_vm1, %v1064_v4  ;;  %v1069_v11 = vld [vmem:[%s1247_s30] sm:$0xff]   ;;  %v1309_v49 = vunpack.c.0.s8 %v1085_v46  ;;  %v1329_v60 = vunpack.c.1.s8 %v1085_v46  ;;  %v1333_v63 = vunpack.c.2.s8 %v1085_v46  ;;  %v1350_v8 = vunpack.c.3.s8 %v1085_v46 }
  0x12   : > { %1043 = vmatmul.msk.bf16.vlgmr.msra.gmra.mxu0 %vm485_vm1, %v1064_v4  ;;  %v1255_v14 = vunpack.c.0.s8 %v1069_v11  ;;  %v1264_v16 = vld [vmem:[%s1485_s5] ss:$0 sm:$0xff]  ;;  %v1269_v21 = vunpack.c.1.s8 %v1069_v11  ;;  %v1282_v31 = vunpack.c.2.s8 %v1069_v11  ;;  %v1305_v45 = vunpack.c.3.s8 %v1069_v11 }
  0x13   : > { %vm736_vm13 = vcmp.eq.s32.totalorder %v1309_v49, 2 }
  0x14   : > { %vm716_vm3 = vcmp.eq.s32.totalorder %v1255_v14, 1  ;;  %vm748_vm4 = vcmp.eq.s32.totalorder %v1255_v14, 3  ;;  %vm717_vm5 = vcmp.eq.s32.totalorder %v1269_v21, 1  ;;  %vm718_vm7 = vcmp.eq.s32.totalorder %v1282_v31, 1 }
  0x15   : > { %vm733_vm8 = vcmp.eq.s32.totalorder %v1269_v21, 2  ;;  %vm734_vm9 = vcmp.eq.s32.totalorder %v1282_v31, 2  ;;  %vm750_vm10 = vcmp.eq.s32.totalorder %v1282_v31, 3  ;;  %vm732_vm11 = vcmp.eq.s32.totalorder %v1255_v14, 2 }
  0x16   : > { %vm719_vm12 = vcmp.eq.s32.totalorder %v1305_v45, 1  ;;  %vm749_vm14 = vcmp.eq.s32.totalorder %v1269_v21, 3  ;;  %vm751_vm15 = vcmp.eq.s32.totalorder %v1305_v45, 3  ;;  %vm735_vm2 = vcmp.eq.s32.totalorder %v1305_v45, 2 }
  0x21   : > { %1048 = vmatmul.msk.bf16.gmra.mxu1 %vm485_vm1, %v1065_v5 }
  0x22   : > { %1044 = vmatmul.msk.bf16.gmra.mxu0 %vm485_vm1, %v1065_v5 }
  0x31   : > { %1049 = vmatmul.msk.bf16.gmra.mxu1 %vm485_vm1, %v1066_v6 }
  0x32   : > { %1045 = vmatmul.msk.bf16.gmra.mxu0 %vm485_vm1, %v1066_v6 }
  0x41   : > { %1050 = vmatmul.msk.bf16.gmra.mxu1 %vm485_vm1, %v1067_v7 }
  0x42   : > { %1046 = vmatmul.msk.bf16.gmra.mxu0 %vm485_vm1, %v1067_v7 }
  0x8e   : > { %v548_v12 = vpop.f32.mrf.mxu1 }
  0x8f   : > { %v511_v13 = vpop.f32.mrf.mxu0  ;;  %v549_v18 = vadd.f32 %v1264_v16, %v548_v12 }
  0x90   : > { %v1258_v15 = vadd.f32 %v1252_v10, %v511_v13 }
  0x91   : > { %v568_v24 = vmax.f32 %v549_v18, 0.0 }
  0x92   : > { %v724_v17 = vsel %vm716_vm3, %v1258_v15, 0.0  ;;  %v756_v26 = vsel %vm748_vm4, %v1258_v15, 0.0  ;;  %v740_v50 = vsel %vm732_vm11, %v1258_v15, 0.0  ;;  %vm737_vm3 = vcmp.eq.s32.totalorder %v1329_v60, 2 }
  0x93   : > { %772 = vrot.lane.b32.xlu0 %v724_v17, %s1142_s19  ;;  %836 = vrot.lane.b32.xlu1 %v756_v26, %s1143_s20  ;;  %vm722_vm4 = vcmp.eq.s32.totalorder %v1333_v63, 1  ;;  %vm754_vm11 = vcmp.eq.s32.totalorder %v1333_v63, 3 }
  0x94   : > { %804 = vrot.lane.b32.xlu2 %v740_v50, %s1144_s21 }
  0x96   : > { %v550_v19 = vpop.f32.mrf.mxu1 }
  0x97   : > { %v513_v20 = vpop.f32.mrf.mxu0  ;;  %v551_v22 = vadd.f32 %v1264_v16, %v550_v19 }
  0x98   : > { %v1273_v23 = vadd.f32 %v1252_v10, %v513_v20 }
  0x99   : > { %v569_v25 = vmax.f32 %v551_v22, 0.0 }
  0x9a   : > { %v725_v27 = vsel %vm717_vm5, %v1273_v23, 0.0  ;;  %v741_v34 = vsel %vm733_vm8, %v1273_v23, 0.0  ;;  %v757_v54 = vsel %vm749_vm14, %v1273_v23, 0.0  ;;  %vm720_vm5 = vcmp.eq.s32.totalorder %v1309_v49, 1 }
  0x9b   : > { %774 = vrot.lane.b32.xlu0 %v725_v27, %s1142_s19  ;;  %v576_v28 = vpack.c.bf16 %v569_v25, %v568_v24  ;;  %vm723_vm8 = vcmp.eq.s32.totalorder %v1350_v8, 1  ;;  %vm868_vm14 = vcmask 130048  }
  0x9c   : > { %838 = vrot.lane.b32.xlu2 %v757_v54, %s1143_s20 }
  0x9d   : > { %1051 = vmatmul.msk.bf16.vlgmr.msra.gmra.mxu2 %vm585_vm6, %v576_v28 }
  0x9e   : > { %v553_v29 = vpop.f32.mrf.mxu1 }
  0x9f   : > { %v516_v30 = vpop.f32.mrf.mxu0  ;;  %v554_v35 = vadd.f32 %v1264_v16, %v553_v29 }
  0xa0   : > { %v1285_v32 = vadd.f32 %v1252_v10, %v516_v30  ;;  %v643_v30 = vld [vmem:[%s1488_s8] sm:$0xf] }
  0xa1   : > { %v570_v39 = vmax.f32 %v554_v35, 0.0  ;;  %v1116_v35 = vld [vmem:[%s1487_s7] ss:$0 sm:$0xff] }
  0xa2   : > { %v726_v33 = vsel %vm718_vm7, %v1285_v32, 0.0  ;;  %v742_v41 = vsel %vm734_vm9, %v1285_v32, 0.0  ;;  %v758_v42 = vsel %vm750_vm10, %v1285_v32, 0.0  ;;  %vm739_vm7 = vcmp.eq.s32.totalorder %v1350_v8, 2 }
  0xa3   : > { %776 = vrot.lane.b32.xlu1 %v726_v33, %s1142_s19  ;;  %806 = vrot.lane.b32.xlu0 %v741_v34, %s1144_s21  ;;  %vm752_vm9 = vcmp.eq.s32.totalorder %v1309_v49, 3  ;;  %vm753_vm10 = vcmp.eq.s32.totalorder %v1329_v60, 3  ;;  %v661_v33 = vsel %vm498_vm0, %v643_v30, 0  ;;  %vm700_vm0 = vcmp.eq.s32.totalorder %v1255_v14, 0 }
  0xa4   : > { %670 = vmatpush.bf16.msra.mxu3 %v661_v33 }
  0xa6   : > { %v555_v36 = vpop.f32.mrf.mxu1 }
  0xa7   : > { %v518_v37 = vpop.f32.mrf.mxu0  ;;  %v556_v38 = vadd.f32 %v1264_v16, %v555_v36 }
  0xa8   : > { %v1302_v44 = vadd.f32 %v1252_v10, %v518_v37 }
  0xa9   : > { %v571_v40 = vmax.f32 %v556_v38, 0.0 }
  0xaa   : > { %v727_v52 = vsel %vm719_vm12, %v1302_v44, 0.0  ;;  %v759_v59 = vsel %vm751_vm15, %v1302_v44, 0.0  ;;  %v743_v2 = vsel %vm735_vm2, %v1302_v44, 0.0  ;;  %vm721_vm12 = vcmp.eq.s32.totalorder %v1329_v60, 1 }
  0xab   : > { %808 = vrot.lane.b32.xlu1 %v742_v41, %s1144_s21  ;;  %840 = vrot.lane.b32.xlu0 %v758_v42, %s1143_s20  ;;  %v577_v43 = vpack.c.bf16 %v571_v40, %v570_v39  ;;  %vm701_vm15 = vcmp.eq.s32.totalorder %v1269_v21, 0  ;;  %vm877_vm2 = vcmask 195584  }
  0xac   : > { %810 = vrot.lane.b32.xlu2 %v743_v2, %s1144_s21 }
  0xad   : > { %1052 = vmatmul.msk.bf16.gmra.mxu2 %vm585_vm6, %v577_v43 }
  0xae   : > { %v558_v47 = vpop.f32.mrf.mxu1 }
  0xaf   : > { %v521_v48 = vpop.f32.mrf.mxu0  ;;  %v559_v55 = vadd.f32 %v1264_v16, %v558_v47 }
  0xb0   : > { %v1313_v51 = vadd.f32 %v1252_v10, %v521_v48 }
  0xb1   : > { %v572_v61 = vmax.f32 %v559_v55, 0.0 }
  0xb2   : > { %v744_v53 = vsel %vm736_vm13, %v1313_v51, 0.0  ;;  %v728_v9 = vsel %vm720_vm5, %v1313_v51, 0.0  ;;  %vm738_vm13 = vcmp.eq.s32.totalorder %v1333_v63, 2  ;;  %vm703_vm5 = vcmp.eq.s32.totalorder %v1305_v45, 0 }
  0xb3   : > { %778 = vrot.lane.b32.xlu1 %v727_v52, %s1142_s19  ;;  %812 = vrot.lane.b32.xlu0 %v744_v53, %s1144_s21 }
  0xb4   : > { %780 = vrot.lane.b32.xlu2 %v728_v9, %s1142_s19 }
  0xb6   : > { %v560_v56 = vpop.f32.mrf.mxu1 }
  0xb7   : > { %v523_v57 = vpop.f32.mrf.mxu0  ;;  %v561_v58 = vadd.f32 %v1264_v16, %v560_v56 }
  0xb8   : > { %v1336_v1 = vadd.f32 %v1252_v10, %v523_v57 }
  0xb9   : > { %v573_v62 = vmax.f32 %v561_v58, 0.0 }
  0xba   : > { %v745_v6 = vsel %vm737_vm3, %v1336_v1, 0.0  ;;  %v729_v27 = vsel %vm721_vm12, %v1336_v1, 0.0  ;;  %vm902_vm3 = vcmask 261120  }
  0xbb   : > { %842 = vrot.lane.b32.xlu1 %v759_v59, %s1143_s20  ;;  %v578_v0 = vpack.c.bf16 %v573_v62, %v572_v61 }
  0xbd   : > { %1053 = vmatmul.msk.bf16.gmra.mxu2 %vm585_vm6, %v578_v0 }
  0xbe   : > { %v563_v3 = vpop.f32.mrf.mxu1 }
  0xbf   : > { %v526_v4 = vpop.f32.mrf.mxu0  ;;  %v564_v11 = vadd.f32 %v1264_v16, %v563_v3 }
  0xc0   : > { %v1343_v5 = vadd.f32 %v1252_v10, %v526_v4 }
  0xc1   : > { %v574_v19 = vmax.f32 %v564_v11, 0.0 }
  0xc2   : > { %v730_v7 = vsel %vm722_vm4, %v1343_v5, 0.0  ;;  %v762_v26 = vsel %vm754_vm11, %v1343_v5, 0.0  ;;  %v746_v28 = vsel %vm738_vm13, %v1343_v5, 0.0  ;;  %vm702_vm4 = vcmp.eq.s32.totalorder %v1282_v31, 0 }
  0xc3   : > { %784 = vrot.lane.b32.xlu0 %v730_v7, %s1142_s19  ;;  %814 = vrot.lane.b32.xlu1 %v745_v6, %s1144_s21 }
  0xc6   : > { %v565_v12 = vpop.f32.mrf.mxu1 }
  0xc7   : > { %v528_v13 = vpop.f32.mrf.mxu0  ;;  %v566_v17 = vadd.f32 %v1264_v16, %v565_v12  ;;  %v761_v16 = vsel %vm753_vm10, %v1336_v1, 0.0  ;;  %vm707_vm10 = vcmp.eq.s32.totalorder %v1350_v8, 0 }
  0xc8   : > { %v1359_v18 = vadd.f32 %v1252_v10, %v528_v13  ;;  %v760_v10 = vsel %vm752_vm9, %v1313_v51, 0.0  ;;  %vm706_vm9 = vcmp.eq.s32.totalorder %v1333_v63, 0 }
  0xc9   : > { %v575_v20 = vmax.f32 %v566_v17, 0.0  ;;  %844 = vrot.lane.b32.xlu2 %v760_v10, %s1143_s20 }
  0xca   : > { %v747_v22 = vsel %vm739_vm7, %v1359_v18, 0.0  ;;  %v731_v24 = vsel %vm723_vm8, %v1359_v18, 0.0  ;;  %vm704_vm7 = vcmp.eq.s32.totalorder %v1309_v49, 0  ;;  %vm705_vm8 = vcmp.eq.s32.totalorder %v1329_v60, 0 }
  0xcb   : > { %818 = vrot.lane.b32.xlu0 %v747_v22, %s1144_s21  ;;  %786 = vrot.lane.b32.xlu1 %v731_v24, %s1142_s19  ;;  %v579_v25 = vpack.c.bf16 %v575_v20, %v574_v19  ;;  %v708_v19 = vsel %vm700_vm0, %v1258_v15, 0.0  ;;  %v1401_v22 = vld [vmem:[%s1489_s9] ss:$0 sm:$0xff]  ;;  %v709_v15 = vsel %vm701_vm15, %v1273_v23, 0.0 }
  0xcd   : > { %1054 = vmatmul.msk.bf16.gmra.mxu2 %vm585_vm6, %v579_v25  ;;  %vm755_vm6 = vcmp.eq.s32.totalorder %v1350_v8, 3 }
  0xce   : > { %v763_v29 = vsel %vm755_vm6, %v1359_v18, 0.0 }
  0xd1   : > { %782 = vrot.lane.b32.xlu2 %v729_v27, %s1142_s19 }
  0xd3   : > { %846 = vrot.lane.b32.xlu0 %v761_v16, %s1143_s20  ;;  %848 = vrot.lane.b32.xlu1 %v762_v26, %s1143_s20 }
  0xd9   : > { %816 = vrot.lane.b32.xlu2 %v746_v28, %s1144_s21 }
  0xe1   : > { %850 = vrot.lane.b32.xlu2 %v763_v29, %s1143_s20 }
  0xee   : > { %v805_v12 = vpop.permute.xlu2 %804 }
  0xf6   : > { %v839_v20 = vpop.permute.xlu2 %838 }
 0x105   : > { %v773_v7 = vpop.permute.xlu0 %772  ;;  %v837_v9 = vpop.permute.xlu1 %836 }
 0x106   : > { %v860_v24 = vsel %vm485_vm1, %v708_v19, %v773_v7  ;;  %v811_v29 = vpop.permute.xlu2 %810 }
 0x107   : > { %v869_v10 = vsel %vm868_vm14, %v860_v24, %v805_v12 }
 0x108   : > { %v878_v28 = vsel %vm877_vm2, %v869_v10, %v837_v9 }
 0x10d   : > { %v775_v11 = vpop.permute.xlu0 %774 }
 0x10e   : > { %v861_v33 = vsel %vm485_vm1, %v709_v15, %v775_v11 }
 0x115   : > { %v777_v13 = vpop.permute.xlu1 %776  ;;  %v807_v17 = vpop.permute.xlu0 %806 }
 0x116   : > { %v870_v23 = vsel %vm868_vm14, %v861_v33, %v807_v17 }
 0x11d   : > { %v809_v16 = vpop.permute.xlu1 %808  ;;  %v841_v26 = vpop.permute.xlu0 %840 }
 0x120   : > { %v611_v34 = vpop.f32.mrf.mxu2 }
 0x121   : > { %v612_v36 = vadd.f32 %v1116_v35, %v611_v34 }
 0x123   : > { %v631_v39 = vmax.f32 %v612_v36, 0.0  ;;  %v710_v36 = vsel %vm702_vm4, %v1285_v32, 0.0 }
 0x128   : > { %v613_v37 = vpop.f32.mrf.mxu2 }
 0x129   : > { %v614_v38 = vadd.f32 %v1116_v35, %v613_v37  ;;  %v779_v37 = vpop.permute.xlu1 %778 }
 0x12b   : > { %v632_v40 = vmax.f32 %v614_v38, 0.0  ;;  %v813_v38 = vpop.permute.xlu0 %812 }
 0x12d   : > { %v639_v41 = vpack.c.bf16 %v632_v40, %v631_v39  ;;  %v879_v40 = vsel %vm877_vm2, %v870_v23, %v839_v20 }
 0x12f   : > { %1055 = vmatmul.msk.bf16.vlgmr.msra.gmra.mxu3 %vm485_vm1, %v639_v41 }
 0x130   : > { %v616_v42 = vpop.f32.mrf.mxu2 }
 0x131   : > { %v617_v43 = vadd.f32 %v1116_v35, %v616_v42  ;;  %v862_v42 = vsel %vm485_vm1, %v710_v36, %v777_v13 }
 0x133   : > { %v633_v48 = vmax.f32 %v617_v43, 0.0  ;;  %v781_v43 = vpop.permute.xlu2 %780 }
 0x138   : > { %v618_v46 = vpop.f32.mrf.mxu2 }
 0x139   : > { %v619_v47 = vadd.f32 %v1116_v35, %v618_v46 }
 0x13b   : > { %v634_v50 = vmax.f32 %v619_v47, 0.0  ;;  %v871_v47 = vsel %vm868_vm14, %v862_v42, %v809_v16 }
 0x13d   : > { %v640_v52 = vpack.c.bf16 %v634_v50, %v633_v48  ;;  %v711_v48 = vsel %vm703_vm5, %v1302_v44, 0.0 }
 0x13f   : > { %1056 = vmatmul.msk.bf16.gmra.mxu3 %vm485_vm1, %v640_v52  ;;  %v880_v52 = vsel %vm877_vm2, %v871_v47, %v841_v26  ;;  %v714_v26 = vsel %vm706_vm9, %v1343_v5, 0.0  ;;  %v715_v5 = vsel %vm707_vm10, %v1359_v18, 0.0 }
 0x140   : > { %v621_v53 = vpop.f32.mrf.mxu2 }
 0x141   : > { %v622_v54 = vadd.f32 %v1116_v35, %v621_v53  ;;  %v843_v53 = vpop.permute.xlu1 %842 }
 0x143   : > { %v635_v57 = vmax.f32 %v622_v54, 0.0  ;;  %v785_v54 = vpop.permute.xlu0 %784 }
 0x148   : > { %v623_v55 = vpop.f32.mrf.mxu2 }
 0x149   : > { %v624_v56 = vadd.f32 %v1116_v35, %v623_v55 }
 0x14b   : > { %v636_v58 = vmax.f32 %v624_v56, 0.0  ;;  %v863_v56 = vsel %vm485_vm1, %v711_v48, %v779_v37 }
 0x14d   : > { %v641_v59 = vpack.c.bf16 %v636_v58, %v635_v57  ;;  %v872_v58 = vsel %vm868_vm14, %v863_v56, %v811_v29 }
 0x14f   : > { %1057 = vmatmul.msk.bf16.gmra.mxu3 %vm485_vm1, %v641_v59  ;;  %v845_v59 = vpop.permute.xlu2 %844 }
 0x150   : > { %v626_v61 = vpop.f32.mrf.mxu2 }
 0x151   : > { %v627_v62 = vadd.f32 %v1116_v35, %v626_v61  ;;  %v712_v61 = vsel %vm704_vm7, %v1313_v51, 0.0  ;;  %v713_v51 = vsel %vm705_vm8, %v1336_v1, 0.0 }
 0x153   : > { %v637_v3 = vmax.f32 %v627_v62, 0.0 }
 0x157   : > { %v783_v12 = vpop.permute.xlu2 %782 }
 0x158   : > { %v628_v0 = vpop.f32.mrf.mxu2  ;;  %v865_v20 = vsel %vm485_vm1, %v713_v51, %v783_v12 }
 0x159   : > { %v629_v2 = vadd.f32 %v1116_v35, %v628_v0  ;;  %v881_v0 = vsel %vm877_vm2, %v872_v58, %v843_v53 }
 0x15b   : > { %v638_v4 = vmax.f32 %v629_v2, 0.0  ;;  %v815_v2 = vpop.permute.xlu1 %814 }
 0x15c   : > { %v874_v10 = vsel %vm868_vm14, %v865_v20, %v815_v2 }
 0x15d   : > { %v642_v6 = vpack.c.bf16 %v638_v4, %v637_v3  ;;  %v864_v4 = vsel %vm485_vm1, %v712_v61, %v781_v43 }
 0x15e   : > { %v873_v9 = vsel %vm868_vm14, %v864_v4, %v813_v38 }
 0x15f   : > { %1058 = vmatmul.msk.bf16.gmra.mxu3 %vm485_vm1, %v642_v6  ;;  %v819_v6 = vpop.permute.xlu0 %818  ;;  %v882_v17 = vsel %vm877_vm2, %v873_v9, %v845_v59  ;;  %v817_v29 = vpop.permute.xlu2 %816 }
 0x163   : > { %v787_v24 = vpop.permute.xlu1 %786 }
 0x164   : > { %v867_v37 = vsel %vm485_vm1, %v715_v5, %v787_v24 }
 0x167   : > { %v847_v16 = vpop.permute.xlu0 %846  ;;  %v851_v8 = vpop.permute.xlu2 %850 }
 0x168   : > { %v883_v15 = vsel %vm877_vm2, %v874_v10, %v847_v16 }
 0x1b2   : > { %v672_v25 = vpop.f32.mrf.mxu3 }
 0x1b3   : > { %v673_v14 = vadd.f32 %v1401_v22, %v672_v25 }
 0x1b5   : > { %v692_v27 = vmax.f32 %v673_v14, 0.0 }
 0x1b7   : > { %v886_v30 = vadd.f32 %v878_v28, %v692_v27  ;;  %v866_v28 = vsel %vm485_vm1, %v714_v26, %v785_v54 }
 0x1b8   : > { %v875_v33 = vsel %vm868_vm14, %v866_v28, %v817_v29 }
 0x1b9   : > { %v894_v21 = vmax.f32 %v886_v30, 0.0 }
 0x1ba   : > { %v674_v34 = vpop.f32.mrf.mxu3 }
 0x1bb   : > { %903 = vst.msk [vmem:[%s1414_s11] sm:$0xff] %vm902_vm3, %v894_v21  ;;  %v675_v35 = vadd.f32 %v1401_v22, %v674_v34  ;;  %v849_v21 = vpop.permute.xlu1 %848 }
 0x1bd   : > { %v693_v39 = vmax.f32 %v675_v35, 0.0  ;;  %v884_v35 = vsel %vm877_vm2, %v875_v33, %v849_v21 }
 0x1bf   : > { %v887_v41 = vadd.f32 %v879_v40, %v693_v39  ;;  %v876_v40 = vsel %vm868_vm14, %v867_v37, %v819_v6 }
 0x1c0   : > { %v885_v43 = vsel %vm877_vm2, %v876_v40, %v851_v8 }
 0x1c1   : > { %v895_v31 = vmax.f32 %v887_v41, 0.0 }
 0x1c2   : > { %v677_v46 = vpop.f32.mrf.mxu3 }
 0x1c3   : > { %904 = vst.msk [vmem:[%s1414_s11 + $0x8] sm:$0xff] %vm902_vm3, %v895_v31  ;;  %v678_v32 = vadd.f32 %v1401_v22, %v677_v46 }
 0x1c5   : > { %v694_v50 = vmax.f32 %v678_v32, 0.0 }
 0x1c7   : > { %v888_v55 = vadd.f32 %v880_v52, %v694_v50 }
 0x1c9   : > { %v896_v57 = vmax.f32 %v888_v55, 0.0 }
 0x1ca   : > { %v679_v45 = vpop.f32.mrf.mxu3 }
 0x1cb   : > { %905 = vst.msk [vmem:[%s1414_s11 + $0x10] sm:$0xff] %vm902_vm3, %v896_v57  ;;  %v680_v44 = vadd.f32 %v1401_v22, %v679_v45 }
 0x1cd   : > { %v695_v62 = vmax.f32 %v680_v44, 0.0 }
 0x1cf   : > { %v889_v3 = vadd.f32 %v881_v0, %v695_v62 }
 0x1d1   : > { %v897_v49 = vmax.f32 %v889_v3, 0.0 }
 0x1d2   : > { %v682_v7 = vpop.f32.mrf.mxu3 }
 0x1d3   : > { %906 = vst.msk [vmem:[%s1414_s11 + $0x18] sm:$0xff] %vm902_vm3, %v897_v49  ;;  %v683_v11 = vadd.f32 %v1401_v22, %v682_v7 }
 0x1d5   : > { %v696_v13 = vmax.f32 %v683_v11, 0.0 }
 0x1d7   : > { %v890_v19 = vadd.f32 %v882_v17, %v696_v13 }
 0x1d9   : > { %v898_v25 = vmax.f32 %v890_v19, 0.0 }
 0x1da   : > { %v684_v60 = vpop.f32.mrf.mxu3 }
 0x1db   : > { %907 = vst.msk [vmem:[%s1414_s11 + $0x20] sm:$0xff] %vm902_vm3, %v898_v25  ;;  %v685_v1 = vadd.f32 %v1401_v22, %v684_v60 }
 0x1dd   : > { %v697_v14 = vmax.f32 %v685_v1, 0.0 }
 0x1df   : > { %v891_v27 = vadd.f32 %v883_v15, %v697_v14 }
 0x1e1   : > { %v899_v30 = vmax.f32 %v891_v27, 0.0 }
 0x1e2   : > { %v687_v63 = vpop.f32.mrf.mxu3 }
 0x1e3   : > { %908 = vst.msk [vmem:[%s1414_s11 + $0x28] sm:$0xff] %vm902_vm3, %v899_v30  ;;  %v688_v34 = vadd.f32 %v1401_v22, %v687_v63 }
 0x1e5   : > { %v698_v23 = vmax.f32 %v688_v34, 0.0 }
 0x1e7   : > { %v892_v36 = vadd.f32 %v884_v35, %v698_v23 }
 0x1e9   : > { %v900_v38 = vmax.f32 %v892_v36, 0.0 }
 0x1ea   : > { %v689_v39 = vpop.f32.mrf.mxu3 }
 0x1eb   : > { %909 = vst.msk [vmem:[%s1414_s11 + $0x30] sm:$0xff] %vm902_vm3, %v900_v38  ;;  %v690_v41 = vadd.f32 %v1401_v22, %v689_v39 }
 0x1ed   : > { %v699_v42 = vmax.f32 %v690_v41, 0.0 }
 0x1ef   : > { %v893_v31 = vadd.f32 %v885_v43, %v699_v42 }
 0x1f1   : > { %v901_v18 = vmax.f32 %v893_v31, 0.0 }
 0x1f3   : > { %910 = vst.msk [vmem:[%s1414_s11 + $0x38] sm:$0xff] %vm902_vm3, %v901_v18 }
 0x1f4 PF: > { %s20_s15 = sadd.s32 1, %s1140_s15   ;;  %s1491_s13 = smov %s1136_s14 }
 0x1f5   : > { %p17_p5 = scmp.ge.s32.totalorder %s20_s15, 4   ;;  %s1492_s14 = smov %s1494_s16 }
 0x1f7   :  { %19 = sbr.rel (!%p17_p5) target bundleno = 2 (0x2), region = 93 }

</bundles_post_ra>
